<compile_context>
chip_gen: v7x
topology: tpu7x:2x2x1
jax: 0.10.0
libtpu: 0.0.40
codegen_flags: <defaults>
</compile_context>

<pallas_src>
import functools

import jax
import jax.numpy as jnp
from jax.experimental import pallas as pl
from jax.experimental.pallas import tpu as pltpu

LN_EPS = 1e-5


def _round_up(n, m):
    return ((n + m - 1) // m) * m


def _skip_ln_kernel(x_ref, w_ref, b_ref, g_ref, beta_ref, o_ref, acc_ref,
                    *, bk):
    # x_ref:    (TM, H)  f32   full row tile (resident across the K axis)
    # w_ref:    (H, bk)  bf16  K-slab of nn.Linear weight ((out, in) layout)
    # b_ref:    (1, H)   f32   linear bias
    # g_ref:    (1, H)   f32   layernorm gamma
    # beta_ref: (1, H)   f32   layernorm beta
    # acc_ref:  (TM, H)  f32   VMEM accumulator for x @ W^T
    k = pl.program_id(1)

    @pl.when(k == 0)
    def _():
        acc_ref[...] = jnp.zeros_like(acc_ref)

    # Slice the K-slab of x out of the resident f32 tile and cast to bf16
    # for the MXU (cast cost is O(TM*bk), negligible vs. the matmul).
    if bk == x_ref.shape[-1]:
        x_slab = x_ref[...].astype(jnp.bfloat16)
    else:
        start = pl.multiple_of(k * bk, 128)
        x_slab = x_ref[:, pl.ds(start, bk)].astype(jnp.bfloat16)

    # Contract x's in-dim slab with W's in-dim slab (== x @ W^T, K-tiled).
    acc_ref[...] += jax.lax.dot_general(
        x_slab, w_ref[...],
        dimension_numbers=(((1,), (1,)), ((), ())),
        preferred_element_type=jnp.float32)

    @pl.when(k == pl.num_programs(1) - 1)
    def _():
        # residual + bias in f32
        h = acc_ref[...] + x_ref[...] + b_ref[...]
        inv_n = 1.0 / h.shape[-1]
        # fused single-pass mean / variance
        s1 = jnp.sum(h, axis=-1, keepdims=True)
        s2 = jnp.sum(h * h, axis=-1, keepdims=True)
        mean = s1 * inv_n
        var = jnp.maximum(s2 * inv_n - mean * mean, 0.0)
        inv = jax.lax.rsqrt(var + LN_EPS)
        o_ref[...] = ((h - mean) * inv * g_ref[...]
                      + beta_ref[...]).astype(o_ref.dtype)


@functools.partial(jax.jit, static_argnames=("block_rows", "block_k"))
def skip_connection(x, w, b, gamma, beta, block_rows=256, block_k=512):
    """out = LayerNorm(x + x @ w.T + b) * gamma + beta.

    x: [B, S, H].  w: [H, H] (nn.Linear weight, (out, in) layout).
    """
    B, S, H = x.shape
    rows = B * S

    # Row tile: large for MXU/pipeline efficiency, clamped for tiny inputs,
    # always a sublane (8) multiple.
    tm = min(block_rows, _round_up(rows, 8))
    tm = max(8, _round_up(tm, 8))
    rows_p = _round_up(rows, tm)

    # Weight K-slab width (lane-aligned divisor of H, else full H).
    bk = block_k if (block_k % 128 == 0 and H % block_k == 0) else H

    x2 = x.reshape(rows, H).astype(jnp.float32)
    if rows_p != rows:
        x2 = jnp.pad(x2, ((0, rows_p - rows), (0, 0)))
    w_bf = w.astype(jnp.bfloat16)           # bf16 weight, no HBM transpose
    b2 = b.reshape(1, H).astype(jnp.float32)
    g2 = gamma.reshape(1, H).astype(jnp.float32)
    beta2 = beta.reshape(1, H).astype(jnp.float32)

    grid = (rows_p // tm, H // bk)

    # VMEM budget: double-buffered tiles + resident accumulator + headroom.
    est = (2 * tm * H * 4        # x f32 row tiles (double-buffered)
           + 2 * H * bk * 2      # weight slabs (double-buffered, bf16)
           + 2 * tm * H * 4      # output tiles
           + tm * H * 4          # f32 accumulator scratch
           + 6 * H * 4)          # bias / gamma / beta
    # Clamp to 64 MiB so the same request is valid on v7x as well as v5e/v6e.
    vmem_limit = min(64 * 1024 * 1024,
                     max(32 * 1024 * 1024, int(est * 1.5)))

    kernel = functools.partial(_skip_ln_kernel, bk=bk)

    out = pl.pallas_call(
        kernel,
        out_shape=jax.ShapeDtypeStruct((rows_p, H), x.dtype),
        grid_spec=pltpu.PrefetchScalarGridSpec(
            num_scalar_prefetch=0,
            grid=grid,
            in_specs=[
                pl.BlockSpec((tm, H), lambda i, k: (i, 0)),    # x f32 row tile
                pl.BlockSpec((H, bk), lambda i, k: (0, k)),    # weight K-slab
                pl.BlockSpec((1, H), lambda i, k: (0, 0)),     # bias
                pl.BlockSpec((1, H), lambda i, k: (0, 0)),     # gamma
                pl.BlockSpec((1, H), lambda i, k: (0, 0)),     # beta
            ],
            out_specs=pl.BlockSpec((tm, H), lambda i, k: (i, 0)),
            scratch_shapes=[pltpu.VMEM((tm, H), jnp.float32)],
        ),
        compiler_params=pltpu.CompilerParams(
            dimension_semantics=("parallel", "arbitrary"),
            vmem_limit_bytes=vmem_limit),
    )(x2, w_bf, b2, g2, beta2)

    if rows_p != rows:
        out = out[:rows]
    return out.reshape(B, S, H)


def _reference(x, w, b, gamma, beta):
    h = x + jnp.einsum("bsh,oh->bso", x, w) + b
    mean = jnp.mean(h, axis=-1, keepdims=True)
    var = jnp.mean((h - mean) ** 2, axis=-1, keepdims=True)
    return (h - mean) * jax.lax.rsqrt(var + LN_EPS) * gamma + beta


if __name__ == "__main__":
    # Small shapes; rows (=120) intentionally NOT a multiple of the row tile
    # to exercise the padding path, and H=256 with block_k=128 to exercise
    # the K-tiled accumulation + in-kernel lane slicing.
    B, S, H = 2, 60, 256

    key = jax.random.PRNGKey(0)
    kx, kw, kb, kg, kbeta = jax.random.split(key, 5)

    x = jax.random.normal(kx, (B, S, H), dtype=jnp.float32)
    # Deterministic synthetic parameters (not a checkpoint load).
    w = jax.random.normal(kw, (H, H), dtype=jnp.float32) * (1.0 / jnp.sqrt(H))
    b = jax.random.normal(kb, (H,), dtype=jnp.float32) * 0.01
    gamma = jnp.ones((H,), dtype=jnp.float32) + 0.1 * jax.random.normal(
        kg, (H,), dtype=jnp.float32)
    beta = 0.1 * jax.random.normal(kbeta, (H,), dtype=jnp.float32)

    ref = _reference(x, w, b, gamma, beta)

    # Tiled path: grid = (2 row tiles, 2 K slabs).
    out = skip_connection(x, w, b, gamma, beta, block_rows=64, block_k=128)
    out = jax.block_until_ready(out)
    assert out.shape == (B, S, H)
    # bf16 MXU operands => ~1e-2 level error in the Linear branch.
    assert jnp.max(jnp.abs(out - ref)) < 5e-2, "mismatch vs reference (tiled)"

    # Default path: clamped row tile, single K step (no in-kernel slicing).
    out2 = jax.block_until_ready(skip_connection(x, w, b, gamma, beta))
    assert jnp.max(jnp.abs(out2 - ref)) < 5e-2, "mismatch vs reference (default)"

    print("KERNEL_OK")
</pallas_src>

<mosaic_0001>
module attributes {stable_mosaic.version = 11 : i64} {
  func.func @_skip_ln_kernel(%arg0: i32, %arg1: i32, %arg2: memref<64x256xf32, #tpu.memory_space<vmem>>, %arg3: memref<256x128xbf16, #tpu.memory_space<vmem>>, %arg4: memref<1x256xf32, #tpu.memory_space<vmem>>, %arg5: memref<1x256xf32, #tpu.memory_space<vmem>>, %arg6: memref<1x256xf32, #tpu.memory_space<vmem>>, %arg7: memref<64x256xf32, #tpu.memory_space<vmem>>, %arg8: memref<64x256xf32, #tpu.memory_space<vmem>>) attributes {dimension_semantics = [#tpu.dimension_semantics<parallel>, #tpu.dimension_semantics<arbitrary>], iteration_bounds = array<i64: 2, 2>, scalar_prefetch = 0 : i64, scratch_operands = 1 : i64, tpu.core_type = #tpu.core_type<tc>, window_params = [{transform_indices = @transform_0, window_bounds = array<i64: 64, 256>}, {transform_indices = @transform_1, window_bounds = array<i64: 256, 128>}, {pipeline_mode = #tpu.pipeline_mode<synchronous>, transform_indices = @transform_2, window_bounds = array<i64: 1, 256>}, {pipeline_mode = #tpu.pipeline_mode<synchronous>, transform_indices = @transform_3, window_bounds = array<i64: 1, 256>}, {pipeline_mode = #tpu.pipeline_mode<synchronous>, transform_indices = @transform_4, window_bounds = array<i64: 1, 256>}, {transform_indices = @transform_5, window_bounds = array<i64: 64, 256>}]} {
    %c0_i32 = arith.constant 0 : i32
    %0 = arith.cmpi eq, %arg1, %c0_i32 : i32
    %1 = arith.extui %0 : i1 to i32
    %c0_i32_0 = arith.constant 0 : i32
    %2 = arith.cmpi ne, %1, %c0_i32_0 : i32
    scf.if %2 {
      %cst_8 = arith.constant 0.000000e+00 : f32
      %16 = vector.broadcast %cst_8 : f32 to vector<64x256xf32>
      %c0_9 = arith.constant 0 : index
      %c0_10 = arith.constant 0 : index
      %17 = vector.load %arg8[%c0_9, %c0_10] : memref<64x256xf32, #tpu.memory_space<vmem>>, vector<64x256xf32>
      tpu.vector_store %arg8[%c0_9, %c0_10], %16 {strides = array<i32>} : memref<64x256xf32, #tpu.memory_space<vmem>>, vector<64x256xf32>,
    } else {
    }
    %c128_i32 = arith.constant 128 : i32
    %3 = arith.muli %arg1, %c128_i32 : i32
    %4 = tpu.assume_multiple %3, 128 : i32
    %c0 = arith.constant 0 : index
    %5 = arith.index_cast %4 : i32 to index
    %6 = vector.load %arg2[%c0, %5] : memref<64x256xf32, #tpu.memory_space<vmem>>, vector<64x128xf32>
    %7 = arith.truncf %6 : vector<64x128xf32> to vector<64x128xbf16>
    %c0_1 = arith.constant 0 : index
    %c0_2 = arith.constant 0 : index
    %8 = vector.load %arg8[%c0_1, %c0_2] : memref<64x256xf32, #tpu.memory_space<vmem>>, vector<64x256xf32>
    %c0_3 = arith.constant 0 : index
    %c0_4 = arith.constant 0 : index
    %9 = vector.load %arg3[%c0_3, %c0_4] : memref<256x128xbf16, #tpu.memory_space<vmem>>, vector<256x128xbf16>
    %cst = arith.constant dense<0.000000e+00> : vector<64x256xf32>
    %10 = tpu.matmul %7, %9, %cst {dimension_numbers = #tpu.dot_dimension_numbers<[1], [1], [0], [0], [0, 0, 1, 0], [], []>} : vector<64x128xbf16>, vector<256x128xbf16>, vector<64x256xf32> -> vector<64x256xf32>
    %11 = arith.addf %8, %10 : vector<64x256xf32>
    %c0_5 = arith.constant 0 : index
    %c0_6 = arith.constant 0 : index
    %12 = vector.load %arg8[%c0_5, %c0_6] : memref<64x256xf32, #tpu.memory_space<vmem>>, vector<64x256xf32>
    tpu.vector_store %arg8[%c0_5, %c0_6], %11 {strides = array<i32>} : memref<64x256xf32, #tpu.memory_space<vmem>>, vector<64x256xf32>,
    %c1_i32 = arith.constant 1 : i32
    %13 = arith.cmpi eq, %arg1, %c1_i32 : i32
    %14 = arith.extui %13 : i1 to i32
    %c0_i32_7 = arith.constant 0 : i32
    %15 = arith.cmpi ne, %14, %c0_i32_7 : i32
    scf.if %15 {
      %c0_8 = arith.constant 0 : index
      %c0_9 = arith.constant 0 : index
      %16 = vector.load %arg8[%c0_8, %c0_9] : memref<64x256xf32, #tpu.memory_space<vmem>>, vector<64x256xf32>
      %c0_10 = arith.constant 0 : index
      %c0_11 = arith.constant 0 : index
      %17 = vector.load %arg2[%c0_10, %c0_11] : memref<64x256xf32, #tpu.memory_space<vmem>>, vector<64x256xf32>
      %18 = arith.addf %16, %17 : vector<64x256xf32>
      %c0_12 = arith.constant 0 : index
      %c0_13 = arith.constant 0 : index
      %19 = vector.load %arg4[%c0_12, %c0_13] : memref<1x256xf32, #tpu.memory_space<vmem>>, vector<1x256xf32>
      %20 = vector.broadcast %19 : vector<1x256xf32> to vector<64x256xf32>
      %21 = arith.addf %18, %20 : vector<64x256xf32>
      %cst_14 = arith.constant dense<0.000000e+00> : vector<64xf32>
      %22 = vector.multi_reduction <add>, %21, %cst_14 [1] : vector<64x256xf32> to vector<64xf32>
      %23 = vector.shape_cast %22 : vector<64xf32> to vector<64x1xf32>
      %24 = arith.mulf %21, %21 : vector<64x256xf32>
      %cst_15 = arith.constant dense<0.000000e+00> : vector<64xf32>
      %25 = vector.multi_reduction <add>, %24, %cst_15 [1] : vector<64x256xf32> to vector<64xf32>
      %26 = vector.shape_cast %25 : vector<64xf32> to vector<64x1xf32>
      %cst_16 = arith.constant 3.906250e-03 : f32
      %27 = vector.broadcast %cst_16 : f32 to vector<64x1xf32>
      %28 = arith.mulf %23, %27 : vector<64x1xf32>
      %cst_17 = arith.constant 3.906250e-03 : f32
      %29 = vector.broadcast %cst_17 : f32 to vector<64x1xf32>
      %30 = arith.mulf %26, %29 : vector<64x1xf32>
      %31 = arith.mulf %28, %28 : vector<64x1xf32>
      %32 = arith.subf %30, %31 : vector<64x1xf32>
      %cst_18 = arith.constant 0.000000e+00 : f32
      %33 = vector.broadcast %cst_18 : f32 to vector<64x1xf32>
      %34 = arith.maximumf %32, %33 : vector<64x1xf32>
      %cst_19 = arith.constant 9.99999974E-6 : f32
      %35 = vector.broadcast %cst_19 : f32 to vector<64x1xf32>
      %36 = arith.addf %34, %35 : vector<64x1xf32>
      %37 = math.rsqrt %36 : vector<64x1xf32>
      %38 = vector.broadcast %28 : vector<64x1xf32> to vector<64x256xf32>
      %39 = arith.subf %21, %38 : vector<64x256xf32>
      %40 = vector.broadcast %37 : vector<64x1xf32> to vector<64x256xf32>
      %41 = arith.mulf %39, %40 : vector<64x256xf32>
      %c0_20 = arith.constant 0 : index
      %c0_21 = arith.constant 0 : index
      %42 = vector.load %arg5[%c0_20, %c0_21] : memref<1x256xf32, #tpu.memory_space<vmem>>, vector<1x256xf32>
      %43 = vector.broadcast %42 : vector<1x256xf32> to vector<64x256xf32>
      %44 = arith.mulf %41, %43 : vector<64x256xf32>
      %c0_22 = arith.constant 0 : index
      %c0_23 = arith.constant 0 : index
      %45 = vector.load %arg6[%c0_22, %c0_23] : memref<1x256xf32, #tpu.memory_space<vmem>>, vector<1x256xf32>
      %46 = vector.broadcast %45 : vector<1x256xf32> to vector<64x256xf32>
      %47 = arith.addf %44, %46 : vector<64x256xf32>
      %c0_24 = arith.constant 0 : index
      %c0_25 = arith.constant 0 : index
      %48 = vector.load %arg7[%c0_24, %c0_25] : memref<64x256xf32, #tpu.memory_space<vmem>>, vector<64x256xf32>
      tpu.vector_store %arg7[%c0_24, %c0_25], %47 {strides = array<i32>} : memref<64x256xf32, #tpu.memory_space<vmem>>, vector<64x256xf32>,
    } else {
    }
    return
  }
  func.func @transform_0(%arg0: i32, %arg1: i32) -> (i32, i32) {
    %c0_i32 = arith.constant 0 : i32
    %c0_i32_0 = arith.constant 0 : i32
    return %arg0, %c0_i32 : i32, i32
  }
  func.func @transform_1(%arg0: i32, %arg1: i32) -> (i32, i32) {
    %c0_i32 = arith.constant 0 : i32
    %c0_i32_0 = arith.constant 0 : i32
    return %c0_i32, %arg1 : i32, i32
  }
  func.func @transform_2(%arg0: i32, %arg1: i32) -> (i32, i32) {
    %c0_i32 = arith.constant 0 : i32
    %c0_i32_0 = arith.constant 0 : i32
    %c0_i32_1 = arith.constant 0 : i32
    return %c0_i32, %c0_i32_0 : i32, i32
  }
  func.func @transform_3(%arg0: i32, %arg1: i32) -> (i32, i32) {
    %c0_i32 = arith.constant 0 : i32
    %c0_i32_0 = arith.constant 0 : i32
    %c0_i32_1 = arith.constant 0 : i32
    return %c0_i32, %c0_i32_0 : i32, i32
  }
  func.func @transform_4(%arg0: i32, %arg1: i32) -> (i32, i32) {
    %c0_i32 = arith.constant 0 : i32
    %c0_i32_0 = arith.constant 0 : i32
    %c0_i32_1 = arith.constant 0 : i32
    return %c0_i32, %c0_i32_0 : i32, i32
  }
  func.func @transform_5(%arg0: i32, %arg1: i32) -> (i32, i32) {
    %c0_i32 = arith.constant 0 : i32
    %c0_i32_0 = arith.constant 0 : i32
    return %arg0, %c0_i32 : i32, i32
  }
}

</mosaic_0001>

<bundles_post_ra>
// kernel: skip_connection.1
= control target key start
LH: loop header
LB: loop body
LE: loop exit
PB: predicated region body
PF: predicated region fallthrough
CT: control target
= control target key end

     0   :  { %s1365_s18 = smov 0   ;;  %s1367_s19 = smov 0   ;;  %s1792_s0 = inlined_call_operand.vmem [shape: f32[128,256], index: 0, kind: input, shape index: {}]   ;;  %s1793_s1 = inlined_call_operand.vmem [shape: bf16[256,256], index: 1, kind: input, shape index: {}]   ;;  %s1794_s2 = inlined_call_operand.vmem [shape: f32[1,256], index: 2, kind: input, shape index: {}]   ;;  %s1795_s3 = inlined_call_operand.vmem [shape: f32[1,256], index: 3, kind: input, shape index: {}]   ;;  %s1796_s4 = inlined_call_operand.vmem [shape: f32[1,256], index: 4, kind: input, shape index: {}]   ;;  %s1797_s5 = inlined_call_operand.vmem [shape: f32[128,256], index: 5, kind: output, shape index: {}]  }
   0x1   :  { %s1369_s20 = smov 0   ;;  %s1371_s21 = smov 0  }
   0x2   :  { %s1373_s22 = smov 0   ;;  %s1375_s23 = smov 0  }
   0x3   :  { %s1377_s24 = smov 0  }
   0x4 LB: > { %s24_s25 = sadd.s32 1, %s1324_s22  ;;  %s27_s26 = sadd.s32 1, %s1328_s23  ;;  %s1332_s24 = sphi %s1377_s24, %s15_s24   ;;  %s1328_s23 = sphi %s1375_s23, %s1803_s23   ;;  %s1324_s22 = sphi %s1373_s22, %s1802_s22   ;;  %s1320_s21 = sphi %s1371_s21, %s1801_s21   ;;  %s1316_s20 = sphi %s1369_s20, %s1800_s20   ;;  %s1312_s19 = sphi %s1367_s19, %s1799_s19   ;;  %s1308_s18 = sphi %s1365_s18, %s1798_s18  }
   0x5   : > { %p25_p0 = scmp.ge.s32.totalorder %s24_s25, 2  ;;  %s60_s27 = sadd.s32 1, %s1312_s19 }
   0x6   : > { %p67_p1 = scmp.ne.s32.totalorder %s1312_s19, %s1308_s18  ;;  %p68_p2 = scmp.eq.s32.totalorder %s1332_s24, 0 }
   0x7   : > { %s1805_s25 = smov (%p25_p0, %s24_s25), 0  ;;  %s1807_s26 = smov (!%p25_p0, %s27_s26), %s1328_s23 }
   0x8   : > { %s57_s28 = ssub.s32 %s1324_s22, %s1805_s25  ;;  %p69_p3 = por %p68_p2, %p67_p1 }
   0x9   : > { %p29_p4 = scmp.ge.s32.totalorder %s1807_s26, 2  ;;  %p58_p5 = scmp.eq.s32.totalorder %s57_s28, 0 }
   0xa   : > { %p1114_p6 = scmp.ge.s32.totalorder %s1332_s24, 4 }
   0xb   : > { %s1809_s26 = smov (%p29_p4, %s1807_s26), 0 }
   0xc   : > { %s1414_s29 = scalar_select %p58_p5, %s1312_s19, %s60_s27  }
   0xd   : > { %191 = sbr.rel (%p1114_p6) target bundleno = 45 (0x2d), region = 28 }
  0x14   : > { %204 = sbr.rel (!%p69_p3) target bundleno = 45 (0x2d), region = 36  ;;  %s206_s30 = sand.u32 (%p69_p3), 1, %s1312_s19  }
  0x15   : > { %s1116_s6 = sshll.u32 (%p69_p3), %s1324_s22, 2  ;;  %s1115_s7 = sshll.u32 (%p69_p3), %s206_s30, 7 }
  0x16   : > { %s1422_s10 = scalar_lea.vmem (%p69_p3), %s1793_s1, %s1116_s6  ;;  %s1426_s11 = scalar_lea.vmem (%p69_p3), [#allocation3], %s1115_s7 }
  0x17   : > { %v226_v0 = vld [vmem:[%s1422_s10] sm:$0xf] (%p69_p3)  ;;  %v228_v1 = vld [vmem:[%s1422_s10 + $0x8] sm:$0xf] (%p69_p3)  ;;  %v230_v2 = vld [vmem:[%s1422_s10 + $0x10] sm:$0xf] (%p69_p3) }
  0x18   : > { %227 = vst [vmem:[%s1426_s11] sm:$0xf] (%p69_p3), %v226_v0  ;;  %229 = vst [vmem:[%s1426_s11 + $0x4] sm:$0xf] (%p69_p3), %v228_v1  ;;  %v232_v3 = vld [vmem:[%s1422_s10 + $0x18] sm:$0xf] (%p69_p3) }
  0x19   : > { %v234_v4 = vld [vmem:[%s1422_s10 + $0x20] sm:$0xf] (%p69_p3)  ;;  %231 = vst [vmem:[%s1426_s11 + $0x8] sm:$0xf] (%p69_p3), %v230_v2  ;;  %233 = vst [vmem:[%s1426_s11 + $0xc] sm:$0xf] (%p69_p3), %v232_v3 }
  0x1a   : > { %235 = vst [vmem:[%s1426_s11 + $0x10] sm:$0xf] (%p69_p3), %v234_v4  ;;  %v236_v5 = vld [vmem:[%s1422_s10 + $0x28] sm:$0xf] (%p69_p3)  ;;  %v238_v6 = vld [vmem:[%s1422_s10 + $0x30] sm:$0xf] (%p69_p3) }
  0x1b   : > { %v240_v7 = vld [vmem:[%s1422_s10 + $0x38] sm:$0xf]  ;;  %237 = vst [vmem:[%s1426_s11 + $0x14] sm:$0xf] %v236_v5  ;;  %239 = vst [vmem:[%s1426_s11 + $0x18] sm:$0xf] %v238_v6 }
  0x1c   : > { %241 = vst [vmem:[%s1426_s11 + $0x1c] sm:$0xf] %v240_v7  ;;  %v242_v8 = vld [vmem:[%s1422_s10 + $0x40] sm:$0xf]  ;;  %v244_v9 = vld [vmem:[%s1422_s10 + $0x48] sm:$0xf] }
  0x1d   : > { %v246_v10 = vld [vmem:[%s1422_s10 + $0x50] sm:$0xf]  ;;  %243 = vst [vmem:[%s1426_s11 + $0x20] sm:$0xf] %v242_v8  ;;  %245 = vst [vmem:[%s1426_s11 + $0x24] sm:$0xf] %v244_v9 }
  0x1e   : > { %247 = vst [vmem:[%s1426_s11 + $0x28] sm:$0xf] %v246_v10  ;;  %v248_v11 = vld [vmem:[%s1422_s10 + $0x58] sm:$0xf]  ;;  %v250_v12 = vld [vmem:[%s1422_s10 + $0x60] sm:$0xf] }
  0x1f   : > { %v252_v13 = vld [vmem:[%s1422_s10 + $0x68] sm:$0xf]  ;;  %249 = vst [vmem:[%s1426_s11 + $0x2c] sm:$0xf] %v248_v11  ;;  %251 = vst [vmem:[%s1426_s11 + $0x30] sm:$0xf] %v250_v12 }
  0x20   : > { %253 = vst [vmem:[%s1426_s11 + $0x34] sm:$0xf] %v252_v13  ;;  %v254_v14 = vld [vmem:[%s1422_s10 + $0x70] sm:$0xf]  ;;  %v256_v15 = vld [vmem:[%s1422_s10 + $0x78] sm:$0xf] }
  0x21   : > { %v258_v16 = vld [vmem:[%s1422_s10 + $0x80] sm:$0xf]  ;;  %255 = vst [vmem:[%s1426_s11 + $0x38] sm:$0xf] %v254_v14  ;;  %257 = vst [vmem:[%s1426_s11 + $0x3c] sm:$0xf] %v256_v15 }
  0x22   : > { %259 = vst [vmem:[%s1426_s11 + $0x40] sm:$0xf] %v258_v16  ;;  %v260_v17 = vld [vmem:[%s1422_s10 + $0x88] sm:$0xf]  ;;  %v262_v18 = vld [vmem:[%s1422_s10 + $0x90] sm:$0xf] }
  0x23   : > { %v264_v19 = vld [vmem:[%s1422_s10 + $0x98] sm:$0xf]  ;;  %261 = vst [vmem:[%s1426_s11 + $0x44] sm:$0xf] %v260_v17  ;;  %263 = vst [vmem:[%s1426_s11 + $0x48] sm:$0xf] %v262_v18 }
  0x24   : > { %265 = vst [vmem:[%s1426_s11 + $0x4c] sm:$0xf] %v264_v19  ;;  %v266_v20 = vld [vmem:[%s1422_s10 + $0xa0] sm:$0xf]  ;;  %v268_v21 = vld [vmem:[%s1422_s10 + $0xa8] sm:$0xf] }
  0x25   : > { %v270_v22 = vld [vmem:[%s1422_s10 + $0xb0] sm:$0xf]  ;;  %267 = vst [vmem:[%s1426_s11 + $0x50] sm:$0xf] %v266_v20  ;;  %269 = vst [vmem:[%s1426_s11 + $0x54] sm:$0xf] %v268_v21 }
  0x26   : > { %271 = vst [vmem:[%s1426_s11 + $0x58] sm:$0xf] %v270_v22  ;;  %v272_v23 = vld [vmem:[%s1422_s10 + $0xb8] sm:$0xf]  ;;  %v274_v24 = vld [vmem:[%s1422_s10 + $0xc0] sm:$0xf] }
  0x27   : > { %v276_v25 = vld [vmem:[%s1422_s10 + $0xc8] sm:$0xf]  ;;  %273 = vst [vmem:[%s1426_s11 + $0x5c] sm:$0xf] %v272_v23  ;;  %275 = vst [vmem:[%s1426_s11 + $0x60] sm:$0xf] %v274_v24 }
  0x28   : > { %277 = vst [vmem:[%s1426_s11 + $0x64] sm:$0xf] %v276_v25  ;;  %v278_v26 = vld [vmem:[%s1422_s10 + $0xd0] sm:$0xf]  ;;  %v280_v27 = vld [vmem:[%s1422_s10 + $0xd8] sm:$0xf] }
  0x29   : > { %v282_v28 = vld [vmem:[%s1422_s10 + $0xe0] sm:$0xf]  ;;  %279 = vst [vmem:[%s1426_s11 + $0x68] sm:$0xf] %v278_v26  ;;  %281 = vst [vmem:[%s1426_s11 + $0x6c] sm:$0xf] %v280_v27 }
  0x2a   : > { %283 = vst [vmem:[%s1426_s11 + $0x70] sm:$0xf] %v282_v28  ;;  %v284_v29 = vld [vmem:[%s1422_s10 + $0xe8] sm:$0xf]  ;;  %v286_v30 = vld [vmem:[%s1422_s10 + $0xf0] sm:$0xf] }
  0x2b   : > { %v288_v31 = vld [vmem:[%s1422_s10 + $0xf8] sm:$0xf]  ;;  %285 = vst [vmem:[%s1426_s11 + $0x74] sm:$0xf] %v284_v29  ;;  %287 = vst [vmem:[%s1426_s11 + $0x78] sm:$0xf] %v286_v30 }
  0x2c   : > { %289 = vst [vmem:[%s1426_s11 + $0x7c] sm:$0xf] %v288_v31 }
  0x2d PF: > { %p1117_p7 = scmp.ge.s32.totalorder %s1332_s24, 1  ;;  %p375_p8 = scmp.lt.s32.totalorder %s1332_s24, 5 }
  0x2f   : > { %p376_p9 = pnand %p1117_p7, %p375_p8 }
  0x30   : > { %s382_s12 = sand.u32 (!%p376_p9), 1, %s1308_s18   ;;  %s1119_s13 = sshll.u32 (!%p376_p9), %s1320_s21, 3 }
  0x31   : > { %379 = sbr.rel (%p376_p9) target bundleno = 565 (0x235), region = 77  ;;  %s1118_s14 = sshll.u32 (!%p376_p9), %s382_s12, 7 }
  0x32   : > { %p417_p10 = scmp.lt.s32.totalorder (!%p376_p9), %s1119_s13, 15  ;;  %s1504_s7 = scalar_lea.vmem (!%p376_p9), [#allocation3], %s1118_s14 }
  0x33   : > { %p1125_p11 = scmp.ne.s32.totalorder (!%p376_p9), %s1316_s20, 0 }
  0x38   : > { %s1811_s13 = smov (!%p417_p10, %s1119_s13), 15  ;;  %434 = sbr.rel (%p1125_p11) target bundleno = 66 (0x42), region = 85 }
  0x39   : > { %s1147_s15 = sshll.u32 %s1811_s13, 4  ;;  %v1334_v32 = vmov (!%p1125_p11), 0.0  }
  0x3a   : > { %s1497_s27 = scalar_lea.vmem %s1792_s0, %s1147_s15  ;;  %s1502_s6 = scalar_lea.vmem %s1797_s5, %s1147_s15  ;;  %435 = vst [vmem:[#allocation2] sm:$0xff] (!%p1125_p11), %v1334_v32  ;;  %436 = vst [vmem:[#allocation2 + $0x8] sm:$0xff] (!%p1125_p11), %v1334_v32 }
  0x3b   : > { %437 = vst [vmem:[#allocation2 + $0x10] sm:$0xff] (!%p1125_p11), %v1334_v32  ;;  %438 = vst [vmem:[#allocation2 + $0x18] sm:$0xff] (!%p1125_p11), %v1334_v32 }
  0x3c   : > { %439 = vst [vmem:[#allocation2 + $0x20] sm:$0xff] (!%p1125_p11), %v1334_v32  ;;  %440 = vst [vmem:[#allocation2 + $0x28] sm:$0xff] (!%p1125_p11), %v1334_v32 }
  0x3d   : > { %441 = vst [vmem:[#allocation2 + $0x30] sm:$0xff] (!%p1125_p11), %v1334_v32  ;;  %442 = vst [vmem:[#allocation2 + $0x38] sm:$0xff] (!%p1125_p11), %v1334_v32 }
  0x3e   : > { %443 = vst [vmem:[#allocation2 + $0x40] sm:$0xff] (!%p1125_p11), %v1334_v32  ;;  %444 = vst [vmem:[#allocation2 + $0x48] sm:$0xff] (!%p1125_p11), %v1334_v32 }
  0x3f   : > { %445 = vst [vmem:[#allocation2 + $0x50] sm:$0xff] %v1334_v32  ;;  %446 = vst [vmem:[#allocation2 + $0x58] sm:$0xff] %v1334_v32 }
  0x40   : > { %447 = vst [vmem:[#allocation2 + $0x60] sm:$0xff] %v1334_v32  ;;  %448 = vst [vmem:[#allocation2 + $0x68] sm:$0xff] %v1334_v32 }
  0x41   : > { %449 = vst [vmem:[#allocation2 + $0x70] sm:$0xff] %v1334_v32  ;;  %450 = vst [vmem:[#allocation2 + $0x78] sm:$0xff] %v1334_v32 }
  0x42 PF: > { %v1246_v33 = vld [vmem:[%s1504_s7 + $0x40] sm:$0xff]   ;;  %v1248_v35 = vld [vmem:[%s1504_s7 + $0x48] sm:$0xff]   ;;  %s1126_s18 = sshll.u32 %s1316_s20, 7  ;;  %v1250_v37 = vld [vmem:[%s1504_s7 + $0x50] sm:$0xff]   ;;  %p1144_p12 = scmp.ne.s32.totalorder %s1316_s20, 1 }
  0x43   : > { %v1247_v34 = vld [vmem:[%s1504_s7] sm:$0xff]   ;;  %1149 = vmatprep.subr.bf16.mxu0 %v1246_v33  ;;  %1173 = vmatprep.subr.bf16.mxu1 %v1246_v33  ;;  %v1249_v36 = vld [vmem:[%s1504_s7 + $0x8] sm:$0xff]   ;;  %s452_s21 = sshra.s32 %s1126_s18, 7  ;;  %v1251_v38 = vld [vmem:[%s1504_s7 + $0x10] sm:$0xff]  }
  0x44   : > { %1150 = vmatpush3.bf16.xpose.msra.mxu0 %v1247_v34  ;;  %1181 = vmatpush3.bf16.xpose.msra.mxu1 %v1247_v34  ;;  %s1127_s8 = sshll.u32 %s452_s21, 3  ;;  %v1252_v39 = vld [vmem:[%s1504_s7 + $0x58] sm:$0xff]   ;;  %v1254_v47 = vld [vmem:[%s1504_s7 + $0x60] sm:$0xff]   ;;  %v1256_v49 = vld [vmem:[%s1504_s7 + $0x68] sm:$0xff]  }
  0x45   : > { %1151 = vmatprep.subr.bf16.mxu0 %v1248_v35  ;;  %1174 = vmatprep.subr.bf16.mxu1 %v1248_v35  ;;  %s1514_s9 = scalar_lea.vmem %s1497_s27, %s1127_s8  ;;  %v1253_v46 = vld [vmem:[%s1504_s7 + $0x18] sm:$0xff]   ;;  %v1255_v48 = vld [vmem:[%s1504_s7 + $0x20] sm:$0xff]   ;;  %v1257_v50 = vld [vmem:[%s1504_s7 + $0x28] sm:$0xff]  }
  0x46   : > { %v456_v40 = vld [vmem:[%s1514_s9] sm:$0xff]  ;;  %v457_v41 = vld [vmem:[%s1514_s9 + $0x10] sm:$0xff]  ;;  %v1260_v53 = vld [vmem:[%s1504_s7 + $0x78] sm:$0xff]  }
  0x47   : > { %v460_v42 = vld [vmem:[%s1514_s9 + $0x40] sm:$0xff]  ;;  %v464_v43 = vpack.c.bf16 %v457_v41, %v456_v40  ;;  %v461_v44 = vld [vmem:[%s1514_s9 + $0x50] sm:$0xff]  ;;  %v1261_v54 = vld [vmem:[%s1504_s7 + $0x38] sm:$0xff]  }
  0x48   : > { %v466_v45 = vpack.c.bf16 %v461_v44, %v460_v42  ;;  %v1258_v51 = vld [vmem:[%s1504_s7 + $0x70] sm:$0xff]   ;;  %v458_v55 = vld [vmem:[%s1514_s9 + $0x20] sm:$0xff]  ;;  %v469_v63 = vld [vmem:[#allocation2 + $0x8] sm:$0xff] }
  0x49   : > { %1165 = vmatprep.mubr.bf16.mxu0 %v464_v43  ;;  %v1259_v52 = vld [vmem:[%s1504_s7 + $0x30] sm:$0xff]   ;;  %v462_v57 = vld [vmem:[%s1514_s9 + $0x60] sm:$0xff]  ;;  %v477_v0 = vld [vmem:[#allocation2 + $0x48] sm:$0xff] }
  0x4a   : > { %1169 = vmatprep.mubr.bf16.mxu1 %v466_v45  ;;  %v459_v56 = vld [vmem:[%s1514_s9 + $0x30] sm:$0xff]  ;;  %v468_v61 = vld [vmem:[#allocation2] sm:$0xff]  ;;  %v471_v9 = vld [vmem:[#allocation2 + $0x18] sm:$0xff] }
  0x4b   : > { %v463_v58 = vld [vmem:[%s1514_s9 + $0x70] sm:$0xff]  ;;  %v465_v59 = vpack.c.bf16 %v459_v56, %v458_v55  ;;  %v476_v62 = vld [vmem:[#allocation2 + $0x40] sm:$0xff]  ;;  %v479_v10 = vld [vmem:[#allocation2 + $0x58] sm:$0xff] }
  0x4c   : > { %1152 = vmatpush3.bf16.xpose.msra.mxu0 %v1249_v36  ;;  %1182 = vmatpush3.bf16.xpose.msra.mxu1 %v1249_v36  ;;  %v467_v60 = vpack.c.bf16 %v463_v58, %v462_v57  ;;  %v470_v3 = vld [vmem:[#allocation2 + $0x10] sm:$0xff]  ;;  %v472_v21 = vld [vmem:[#allocation2 + $0x20] sm:$0xff]  ;;  %v473_v23 = vld [vmem:[#allocation2 + $0x28] sm:$0xff] }
  0x4d   : > { %1153 = vmatprep.subr.bf16.mxu0 %v1250_v37  ;;  %1175 = vmatprep.subr.bf16.mxu1 %v1250_v37  ;;  %v478_v4 = vld [vmem:[#allocation2 + $0x50] sm:$0xff]  ;;  %v480_v22 = vld [vmem:[#allocation2 + $0x60] sm:$0xff]  ;;  %v481_v24 = vld [vmem:[#allocation2 + $0x68] sm:$0xff] }
  0x4e   : > { %v474_v27 = vld [vmem:[#allocation2 + $0x30] sm:$0xff]  ;;  %v475_v33 = vld [vmem:[#allocation2 + $0x38] sm:$0xff]  ;;  %v737_v56 = vld [vmem:[%s1497_s27] sm:$0xff] (!%p1144_p12) }
  0x4f   : > { %v482_v28 = vld [vmem:[#allocation2 + $0x70] sm:$0xff]  ;;  %v483_v34 = vld [vmem:[#allocation2 + $0x78] sm:$0xff]  ;;  %v738_v57 = vld [vmem:[%s1497_s27 + $0x8] sm:$0xff] (!%p1144_p12) }
  0x54   : > { %1154 = vmatpush3.bf16.xpose.msra.mxu0 %v1251_v38  ;;  %1183 = vmatpush3.bf16.xpose.msra.mxu1 %v1251_v38 }
  0x55   : > { %1155 = vmatprep.subr.bf16.mxu0 %v1252_v39  ;;  %1176 = vmatprep.subr.bf16.mxu1 %v1252_v39 }
  0x5c   : > { %1156 = vmatpush3.bf16.xpose.msra.mxu0 %v1253_v46  ;;  %1184 = vmatpush3.bf16.xpose.msra.mxu1 %v1253_v46 }
  0x5d   : > { %1157 = vmatprep.subr.bf16.mxu0 %v1254_v47  ;;  %1177 = vmatprep.subr.bf16.mxu1 %v1254_v47  ;;  %v741_v47 = vld [vmem:[%s1497_s27 + $0x20] sm:$0xff] (!%p1144_p12) }
  0x64   : > { %1158 = vmatpush3.bf16.xpose.msra.mxu0 %v1255_v48  ;;  %1185 = vmatpush3.bf16.xpose.msra.mxu1 %v1255_v48  ;;  %v771_v48 = vlaneseq (!%p1144_p12) }
  0x65   : > { %1159 = vmatprep.subr.bf16.mxu0 %v1256_v49  ;;  %1178 = vmatprep.subr.bf16.mxu1 %v1256_v49  ;;  %v742_v49 = vld [vmem:[%s1497_s27 + $0x28] sm:$0xff] (!%p1144_p12) }
  0x6c   : > { %1160 = vmatpush3.bf16.xpose.msra.mxu0 %v1257_v50  ;;  %1186 = vmatpush3.bf16.xpose.msra.mxu1 %v1257_v50  ;;  %v769_v50 = vld [vmem:[%s1794_s2] sm:$0x3] (!%p1144_p12) }
  0x6d   : > { %1161 = vmatprep.subr.bf16.mxu0 %v1258_v51  ;;  %1179 = vmatprep.subr.bf16.mxu1 %v1258_v51  ;;  %v772_v51 = vshrl.u32 (!%p1144_p12), %v771_v48, 7 }
  0x74   : > { %1162 = vmatpush3.bf16.xpose.msra.mxu0 %v1259_v52  ;;  %1187 = vmatpush3.bf16.xpose.msra.mxu1 %v1259_v52 }
  0x75   : > { %1163 = vmatprep.subr.bf16.mxu0 %v1260_v53  ;;  %1180 = vmatprep.subr.bf16.mxu1 %v1260_v53 }
  0x7c   : > { %1164 = vmatpush3.bf16.xpose.msra.mxu0 %v1261_v54  ;;  %1188 = vmatpush3.bf16.xpose.msra.mxu1 %v1261_v54 }
  0x83   : > { %1166 = vmatmul.mubr.bf16.vlgmr.msra.gmra.mrb[0].mxu0 %v464_v43  ;;  %1170 = vmatmul.mubr.bf16.vlgmr.msra.gmra.mrb[0].mxu1 %v466_v45 }
  0x84   : > { %1167 = vmatprep.mubr.bf16.mxu0 %v465_v59  ;;  %1171 = vmatprep.mubr.bf16.mxu1 %v467_v60 }
  0x8b   : > { %1168 = vmatmul.mubr.bf16.gmra.mrb[4].mxu0 %v465_v59  ;;  %1172 = vmatmul.mubr.bf16.gmra.mrb[4].mxu1 %v467_v60  ;;  %v1543_v59 = vsub.s32 (!%p1144_p12), 0, %v772_v51  ;;  %v1545_v60 = vsub.s32 (!%p1144_p12), 1, %v772_v51 }
 0x156   : > { %v646_v1 = vpop.f32.mrb[0].mxu0  ;;  %v666_v2 = vpop.f32.mrb[0].mxu1 }
 0x157   : > { %v685_v5 = vadd.f32 %v646_v1, %v468_v61  ;;  %v693_v6 = vadd.f32 %v666_v2, %v476_v62  ;;  %v648_v7 = vpop.f32.mrb[1].mxu0  ;;  %v668_v8 = vpop.f32.mrb[1].mxu1  ;;  %v744_v1 = vld [vmem:[%s1497_s27 + $0x38] sm:$0xff] (!%p1144_p12) }
 0x158   : > { %v686_v11 = vadd.f32 %v648_v7, %v469_v63  ;;  %v694_v12 = vadd.f32 %v668_v8, %v477_v0  ;;  %v650_v13 = vpop.f32.mrb[2].mxu0  ;;  %v670_v14 = vpop.f32.mrb[2].mxu1  ;;  %v743_v0 = vld [vmem:[%s1497_s27 + $0x30] sm:$0xff] (!%p1144_p12)  ;;  %v774_v7 = vrot.slane (!%p1144_p12), %v769_v50, %v1543_v59  ;;  %v778_v8 = vrot.slane (!%p1144_p12), %v769_v50, %v1545_v60 }
 0x159   : > { %701 = vst [vmem:[#allocation2] sm:$0xff] %v685_v5  ;;  %709 = vst [vmem:[#allocation2 + $0x40] sm:$0xff] %v693_v6  ;;  %v687_v15 = vadd.f32 %v650_v13, %v470_v3  ;;  %v695_v16 = vadd.f32 %v670_v14, %v478_v4  ;;  %v652_v17 = vpop.f32.mrb[3].mxu0  ;;  %v672_v18 = vpop.f32.mrb[3].mxu1  ;;  %v739_v6 = vld [vmem:[%s1497_s27 + $0x10] sm:$0xff] (!%p1144_p12) }
 0x15a   : > { %702 = vst [vmem:[#allocation2 + $0x8] sm:$0xff] %v686_v11  ;;  %710 = vst [vmem:[#allocation2 + $0x48] sm:$0xff] %v694_v12  ;;  %v688_v19 = vadd.f32 %v652_v17, %v471_v9  ;;  %v696_v20 = vadd.f32 %v672_v18, %v479_v10  ;;  %v740_v9 = vld [vmem:[%s1497_s27 + $0x18] sm:$0xff] (!%p1144_p12)  ;;  %v747_v14 = vld [vmem:[%s1497_s27 + $0x50] sm:$0xff] (!%p1144_p12) }
 0x15b   : > { %703 = vst [vmem:[#allocation2 + $0x10] sm:$0xff] %v687_v15  ;;  %711 = vst [vmem:[#allocation2 + $0x50] sm:$0xff] %v695_v16  ;;  %v748_v15 = vld [vmem:[%s1497_s27 + $0x58] sm:$0xff] (!%p1144_p12) }
 0x15c   : > { %704 = vst [vmem:[#allocation2 + $0x18] sm:$0xff] %v688_v19  ;;  %712 = vst [vmem:[#allocation2 + $0x58] sm:$0xff] %v696_v20 }
 0x15e   : > { %v656_v25 = vpop.f32.mrb[4].mxu0  ;;  %v676_v26 = vpop.f32.mrb[4].mxu1  ;;  %720 = sbr.rel (%p1144_p12) target bundleno = 565 (0x235), region = 89 }
 0x15f   : > { %v689_v29 = vadd.f32 %v656_v25, %v472_v21  ;;  %v697_v30 = vadd.f32 %v676_v26, %v480_v22  ;;  %v658_v31 = vpop.f32.mrb[5].mxu0  ;;  %v678_v32 = vpop.f32.mrb[5].mxu1  ;;  %v745_v22 = vld [vmem:[%s1497_s27 + $0x40] sm:$0xff] (!%p1144_p12) }
 0x160   : > { %v690_v35 = vadd.f32 %v658_v31, %v473_v23  ;;  %v698_v36 = vadd.f32 %v678_v32, %v481_v24  ;;  %v660_v37 = vpop.f32.mrb[6].mxu0  ;;  %v680_v38 = vpop.f32.mrb[6].mxu1  ;;  %v721_v52 = vld [vmem:[#allocation2] sm:$0xff] (!%p1144_p12)  ;;  %v746_v23 = vld [vmem:[%s1497_s27 + $0x48] sm:$0xff] (!%p1144_p12) }
 0x161   : > { %705 = vst [vmem:[#allocation2 + $0x20] sm:$0xff] %v689_v29  ;;  %713 = vst [vmem:[#allocation2 + $0x60] sm:$0xff] %v697_v30  ;;  %v691_v39 = vadd.f32 %v660_v37, %v474_v27  ;;  %v699_v40 = vadd.f32 %v680_v38, %v482_v28  ;;  %v662_v41 = vpop.f32.mrb[7].mxu0  ;;  %v682_v42 = vpop.f32.mrb[7].mxu1  ;;  %v722_v53 = vld [vmem:[#allocation2 + $0x8] sm:$0xff] (!%p1144_p12)  ;;  %v753_v61 = vadd.f32 (!%p1144_p12), %v737_v56, %v721_v52  ;;  %v729_v16 = vld [vmem:[#allocation2 + $0x40] sm:$0xff] (!%p1144_p12) }
 0x162   : > { %706 = vst [vmem:[#allocation2 + $0x28] sm:$0xff] %v690_v35  ;;  %714 = vst [vmem:[#allocation2 + $0x68] sm:$0xff] %v698_v36  ;;  %v692_v43 = vadd.f32 %v662_v41, %v475_v33  ;;  %v700_v44 = vadd.f32 %v682_v42, %v483_v34  ;;  %v754_v62 = vadd.f32 (!%p1144_p12), %v738_v57, %v722_v53  ;;  %v723_v4 = vld [vmem:[#allocation2 + $0x10] sm:$0xff] (!%p1144_p12)  ;;  %v730_v21 = vld [vmem:[#allocation2 + $0x48] sm:$0xff] (!%p1144_p12) }
 0x163   : > { %707 = vst [vmem:[#allocation2 + $0x30] sm:$0xff] %v691_v39  ;;  %715 = vst [vmem:[#allocation2 + $0x70] sm:$0xff] %v699_v40  ;;  %v724_v5 = vld [vmem:[#allocation2 + $0x18] sm:$0xff] (!%p1144_p12)  ;;  %v731_v10 = vld [vmem:[#allocation2 + $0x50] sm:$0xff] (!%p1144_p12)  ;;  %v755_v12 = vadd.f32 (!%p1144_p12), %v739_v6, %v723_v4  ;;  %v1559_v19 = vadd.f32 (!%p1144_p12), %v774_v7, %v753_v61  ;;  %v761_v39 = vadd.f32 (!%p1144_p12), %v745_v22, %v729_v16 }
 0x164   : > { %708 = vst [vmem:[#allocation2 + $0x38] sm:$0xff] %v692_v43  ;;  %716 = vst [vmem:[#allocation2 + $0x78] sm:$0xff] %v700_v44  ;;  %v732_v11 = vld [vmem:[#allocation2 + $0x58] sm:$0xff] (!%p1144_p12)  ;;  %v756_v13 = vadd.f32 (!%p1144_p12), %v740_v9, %v724_v5  ;;  %v1561_v20 = vadd.f32 (!%p1144_p12), %v778_v8, %v754_v62  ;;  %v751_v29 = vld [vmem:[%s1497_s27 + $0x70] sm:$0xff] (!%p1144_p12)  ;;  %v763_v32 = vadd.f32 (!%p1144_p12), %v747_v14, %v731_v10 }
 0x165   : > { %v1569_v26 = vadd.f32 %v774_v7, %v755_v12  ;;  %v764_v33 = vadd.f32 %v748_v15, %v732_v11  ;;  %v752_v35 = vld [vmem:[%s1497_s27 + $0x78] sm:$0xff]  ;;  %v762_v40 = vadd.f32 %v746_v23, %v730_v21  ;;  %v749_v42 = vld [vmem:[%s1497_s27 + $0x60] sm:$0xff]  ;;  %v750_v43 = vld [vmem:[%s1497_s27 + $0x68] sm:$0xff]  ;;  %v821_v62 = vmul.f32 %v1559_v19, %v1559_v19 }
 0x166   : > { %v1571_v27 = vadd.f32 %v778_v8, %v756_v13  ;;  %v797_v31 = vadd.f32 %v1561_v20, %v1559_v19  ;;  %v1585_v44 = vadd.f32 %v774_v7, %v763_v32 }
 0x167   : > { %v1591_v48 = vadd.f32 %v778_v8, %v762_v40 }
 0x168   : > { %v725_v45 = vld [vmem:[#allocation2 + $0x20] sm:$0xff]  ;;  %v800_v38 = vadd.f32 %v1571_v27, %v1569_v26  ;;  %798 = vadd.xlane.f32.xlu0 %v797_v31  ;;  %v824_v61 = vmul.f32 %v1571_v27, %v1571_v27  ;;  %v831_v9 = vmul.f32 %v1585_v44, %v1585_v44 }
 0x169   : > { %v726_v46 = vld [vmem:[#allocation2 + $0x28] sm:$0xff]  ;;  %v757_v54 = vadd.f32 %v741_v47, %v725_v45  ;;  %v733_v36 = vld [vmem:[#allocation2 + $0x60] sm:$0xff]  ;;  %v1587_v45 = vadd.f32 %v778_v8, %v764_v33  ;;  %v1589_v47 = vadd.f32 %v774_v7, %v761_v39  ;;  %v830_v13 = vmul.f32 %v1591_v48, %v1591_v48 }
 0x16a   : > { %v758_v55 = vadd.f32 %v742_v49, %v726_v46  ;;  %v727_v58 = vld [vmem:[#allocation2 + $0x30] sm:$0xff]  ;;  %v734_v41 = vld [vmem:[#allocation2 + $0x68] sm:$0xff]  ;;  %v765_v50 = vadd.f32 %v749_v42, %v733_v36 }
 0x16b   : > { %v728_v63 = vld [vmem:[#allocation2 + $0x38] sm:$0xff]  ;;  %v759_v2 = vadd.f32 %v743_v0, %v727_v58  ;;  %v1555_v17 = vadd.f32 %v774_v7, %v757_v54  ;;  %v735_v28 = vld [vmem:[#allocation2 + $0x70] sm:$0xff]  ;;  %v766_v51 = vadd.f32 %v750_v43, %v734_v41  ;;  %v812_v52 = vadd.f32 %v1587_v45, %v1585_v44 }
 0x16c   : > { %v760_v3 = vadd.f32 %v744_v1, %v728_v63  ;;  %v1557_v18 = vadd.f32 %v778_v8, %v758_v55  ;;  %v736_v34 = vld [vmem:[#allocation2 + $0x78] sm:$0xff]  ;;  %v767_v46 = vadd.f32 %v751_v29, %v735_v28  ;;  %v809_v53 = vadd.f32 %v1591_v48, %v1589_v47  ;;  %801 = vadd.xlane.f32.xlu0 %v800_v38 }
 0x16d   : > { %v1565_v24 = vadd.f32 %v774_v7, %v759_v2  ;;  %v768_v49 = vadd.f32 %v752_v35, %v736_v34  ;;  %v1601_v56 = vadd.f32 %v774_v7, %v765_v50  ;;  %v1603_v57 = vadd.f32 %v778_v8, %v766_v51 }
 0x16e   : > { %v1567_v25 = vadd.f32 %v778_v8, %v760_v3  ;;  %v803_v30 = vadd.f32 %v1557_v18, %v1555_v17  ;;  %v1597_v54 = vadd.f32 %v774_v7, %v767_v46  ;;  %v823_v58 = vmul.f32 %v1569_v26, %v1569_v26 }
 0x16f   : > { %v1599_v55 = vadd.f32 %v778_v8, %v768_v49  ;;  %v815_v0 = vadd.f32 %v1603_v57, %v1601_v56  ;;  %v822_v1 = vmul.f32 %v1561_v20, %v1561_v20  ;;  %v827_v3 = vmul.f32 %v1565_v24, %v1565_v24 }
 0x170   : > { %v806_v37 = vadd.f32 %v1567_v25, %v1565_v24  ;;  %804 = vadd.xlane.f32.xlu1 %v803_v30  ;;  %810 = vadd.xlane.f32.xlu0 %v809_v53  ;;  %v840_v2 = vadd.f32 %v824_v61, %v823_v58  ;;  %v828_v4 = vmul.f32 %v1567_v25, %v1567_v25 }
 0x171   : > { %v818_v63 = vadd.f32 %v1599_v55, %v1597_v54  ;;  %v837_v5 = vadd.f32 %v822_v1, %v821_v62  ;;  %v825_v6 = vmul.f32 %v1555_v17, %v1555_v17  ;;  %v826_v7 = vmul.f32 %v1557_v18, %v1557_v18 }
 0x172   : > { %v846_v8 = vadd.f32 %v828_v4, %v827_v3  ;;  %v832_v10 = vmul.f32 %v1587_v45, %v1587_v45  ;;  %v829_v12 = vmul.f32 %v1589_v47, %v1589_v47  ;;  %v835_v15 = vmul.f32 %v1597_v54, %v1597_v54 }
 0x173   : > { %v843_v11 = vadd.f32 %v826_v7, %v825_v6  ;;  %v836_v16 = vmul.f32 %v1599_v55, %v1599_v55  ;;  %v833_v22 = vmul.f32 %v1601_v56, %v1601_v56  ;;  %v834_v23 = vmul.f32 %v1603_v57, %v1603_v57 }
 0x174   : > { %807 = vadd.xlane.f32.xlu1 %v806_v37  ;;  %816 = vadd.xlane.f32.xlu0 %v815_v0  ;;  %v852_v14 = vadd.f32 %v832_v10, %v831_v9  ;;  %v849_v21 = vadd.f32 %v830_v13, %v829_v12 }
 0x175   : > { %v858_v28 = vadd.f32 %v836_v16, %v835_v15  ;;  %v855_v29 = vadd.f32 %v834_v23, %v833_v22 }
 0x178   : > { %813 = vadd.xlane.f32.xlu1 %v812_v52  ;;  %838 = vadd.xlane.f32.xlu0 %v837_v5 }
 0x17c   : > { %819 = vadd.xlane.f32.xlu1 %v818_v63  ;;  %844 = vadd.xlane.f32.xlu0 %v843_v11 }
 0x180   : > { %841 = vadd.xlane.f32.xlu1 %v840_v2  ;;  %850 = vadd.xlane.f32.xlu0 %v849_v21 }
 0x184   : > { %847 = vadd.xlane.f32.xlu1 %v846_v8  ;;  %856 = vadd.xlane.f32.xlu0 %v855_v29 }
 0x188   : > { %853 = vadd.xlane.f32.xlu1 %v852_v14 }
 0x18c   : > { %859 = vadd.xlane.f32.xlu1 %v858_v28 }
 0x1f5   : > { %v799_v31 = vpop.xlane.xlu0 %798 }
 0x1f6   : > { %v1641_v38 = vmul.f32 0.00390625, %v799_v31 }
 0x1f8   : > { %v877_v50 = vmul.f32 %v1641_v38, %v1641_v38 }
 0x1f9   : > { %v802_v33 = vpop.xlane.xlu0 %801 }
 0x1fa   : > { %v1643_v39 = vmul.f32 0.00390625, %v802_v33 }
 0x1fc   : > { %v878_v49 = vmul.f32 %v1643_v39, %v1643_v39 }
 0x1fd   : > { %v805_v30 = vpop.xlane.xlu1 %804  ;;  %v811_v35 = vpop.xlane.xlu0 %810 }
 0x1fe   : > { %v1645_v40 = vmul.f32 0.00390625, %v805_v30  ;;  %v1659_v5 = vmul.f32 0.00390625, %v811_v35 }
 0x200   : > { %v879_v63 = vmul.f32 %v1645_v40, %v1645_v40  ;;  %v881_v22 = vmul.f32 %v1659_v5, %v1659_v5 }
 0x201   : > { %v808_v32 = vpop.xlane.xlu1 %807  ;;  %v817_v37 = vpop.xlane.xlu0 %816 }
 0x202   : > { %v1647_v41 = vmul.f32 0.00390625, %v808_v32  ;;  %v1663_v11 = vmul.f32 0.00390625, %v817_v37 }
 0x204   : > { %v880_v61 = vmul.f32 %v1647_v41, %v1647_v41 }
 0x205   : > { %v814_v34 = vpop.xlane.xlu1 %813  ;;  %v839_v43 = vpop.xlane.xlu0 %838 }
 0x206   : > { %v869_v51 = vmul.f32 0.00390625, %v839_v43  ;;  %v1653_v58 = vmul.f32 0.00390625, %v814_v34  ;;  %v883_v34 = vmul.f32 %v1663_v11, %v1663_v11  ;;  %v949_v43 = vld [vmem:[%s1795_s3] sm:$0x3] }
 0x208   : > { %v885_v53 = vsub.f32 %v869_v51, %v877_v50  ;;  %v882_v12 = vmul.f32 %v1653_v58, %v1653_v58 }
 0x209   : > { %v820_v36 = vpop.xlane.xlu1 %819  ;;  %v845_v0 = vpop.xlane.xlu0 %844 }
 0x20a   : > { %v893_v2 = vmax.f32 %v885_v53, 0.0  ;;  %v871_v4 = vmul.f32 0.00390625, %v845_v0  ;;  %v1661_v10 = vmul.f32 0.00390625, %v820_v36  ;;  %v1677_v53 = vrot.slane %v949_v43, %v1543_v59 }
 0x20b   : > { %v1683_v0 = vrot.slane %v949_v43, %v1545_v60 }
 0x20c   : > { %v901_v7 = vadd.f32 1e-05, %v893_v2  ;;  %v887_v9 = vsub.f32 %v871_v4, %v879_v63  ;;  %v884_v32 = vmul.f32 %v1661_v10, %v1661_v10  ;;  %v920_v2 = vsub.f32 %v1571_v27, %v1643_v39 }
 0x20d   : > { %v842_v42 = vpop.xlane.xlu1 %841  ;;  %v851_v14 = vpop.xlane.xlu0 %850  ;;  %v917_v4 = vsub.f32 %v1559_v19, %v1641_v38  ;;  %v923_v27 = vsub.f32 %v1565_v24, %v1647_v41  ;;  %v924_v19 = vsub.f32 %v1567_v25, %v1647_v41  ;;  %v922_v24 = vsub.f32 %v1557_v18, %v1645_v40 }
 0x20e   : > { %v870_v46 = vmul.f32 0.00390625, %v842_v42  ;;  %v895_v16 = vmax.f32 %v887_v9, 0.0  ;;  %v873_v23 = vmul.f32 0.00390625, %v851_v14  ;;  %v927_v18 = vsub.f32 %v1585_v44, %v1653_v58 }
 0x210   : > { %v886_v52 = vsub.f32 %v870_v46, %v878_v49  ;;  %v903_v29 = vadd.f32 1e-05, %v895_v16  ;;  %v889_v31 = vsub.f32 %v873_v23, %v881_v22 }
 0x211   : > { %v848_v62 = vpop.xlane.xlu1 %847  ;;  %v857_v35 = vpop.xlane.xlu0 %856 }
 0x212   : > { %v894_v1 = vmax.f32 %v886_v52, 0.0  ;;  %v872_v3 = vmul.f32 0.00390625, %v848_v62  ;;  %v875_v42 = vmul.f32 0.00390625, %v857_v35  ;;  %v897_v46 = vmax.f32 %v889_v31, 0.0 }
 0x213   : > { %v925_v35 = vsub.f32 %v1589_v47, %v1659_v5 }
 0x214   : > { %v902_v6 = vadd.f32 1e-05, %v894_v1  ;;  %v888_v8 = vsub.f32 %v872_v3, %v880_v61  ;;  %v891_v51 = vsub.f32 %v875_v42, %v883_v34  ;;  %v905_v52 = vadd.f32 1e-05, %v897_v46  ;;  %v977_v61 = vld [vmem:[%s1796_s4] sm:$0x3] }
 0x215   : > { %v854_v13 = vpop.xlane.xlu1 %853  ;;  %v919_v1 = vsub.f32 %v1569_v26, %v1643_v39 }
 0x216   : > { %1262 = vrsqrt.f32 %v902_v6  ;;  %v896_v15 = vmax.f32 %v888_v8, 0.0  ;;  %v874_v21 = vmul.f32 0.00390625, %v854_v13  ;;  %v899_v63 = vmax.f32 %v891_v51, 0.0 }
 0x217   : > { %1264 = vrsqrt.f32 %v901_v7  ;;  %v918_v6 = vsub.f32 %v1561_v20, %v1641_v38  ;;  %v1697_v13 = vrot.slane %v977_v61, %v1545_v60  ;;  %v921_v60 = vsub.f32 %v1555_v17, %v1645_v40 }
 0x218   : > { %v904_v28 = vadd.f32 1e-05, %v896_v15  ;;  %v890_v30 = vsub.f32 %v874_v21, %v882_v12  ;;  %v907_v8 = vadd.f32 1e-05, %v899_v63  ;;  %v1694_v12 = vrot.slane %v977_v61, %v1543_v59 }
 0x219   : > { %v860_v33 = vpop.xlane.xlu1 %859  ;;  %v928_v40 = vsub.f32 %v1587_v45, %v1653_v58  ;;  %v932_v51 = vsub.f32 %v1599_v55, %v1661_v10  ;;  %v929_v63 = vsub.f32 %v1601_v56, %v1663_v11 }
 0x21a   : > { %1266 = vrsqrt.f32 %v904_v28  ;;  %v898_v36 = vmax.f32 %v890_v30, 0.0  ;;  %v876_v37 = vmul.f32 0.00390625, %v860_v33 }
 0x21b   : > { %1268 = vrsqrt.f32 %v903_v29 }
 0x21c   : > { %v906_v49 = vadd.f32 1e-05, %v898_v36  ;;  %v892_v50 = vsub.f32 %v876_v37, %v884_v32  ;;  %v926_v36 = vsub.f32 %v1591_v48, %v1659_v5 }
 0x21e   : > { %1270 = vrsqrt.f32 %v906_v49  ;;  %v900_v62 = vmax.f32 %v892_v50, 0.0  ;;  %v931_v50 = vsub.f32 %v1597_v54, %v1661_v10 }
 0x21f   : > { %1272 = vrsqrt.f32 %v905_v52 }
 0x220   : > { %v1263_v3 = vpop.eup %1262  ;;  %v908_v7 = vadd.f32 1e-05, %v900_v62 }
 0x221   : > { %v1265_v9 = vpop.eup %1264  ;;  %v935_v26 = vmul.f32 %v1263_v3, %v919_v1  ;;  %v936_v14 = vmul.f32 %v1263_v3, %v920_v2  ;;  %v930_v1 = vsub.f32 %v1603_v57, %v1663_v11 }
 0x222   : > { %v933_v39 = vmul.f32 %v1265_v9, %v917_v4  ;;  %v934_v15 = vmul.f32 %v1265_v9, %v918_v6  ;;  %1274 = vrsqrt.f32 %v908_v7 }
 0x223   : > { %v963_v20 = vmul.f32 %v1677_v53, %v935_v26  ;;  %v964_v38 = vmul.f32 %v1683_v0, %v936_v14  ;;  %1276 = vrsqrt.f32 %v907_v8 }
 0x224   : > { %v1267_v59 = vpop.eup %1266  ;;  %v961_v16 = vmul.f32 %v1677_v53, %v933_v39  ;;  %v962_v21 = vmul.f32 %v1683_v0, %v934_v15 }
 0x225   : > { %v1269_v22 = vpop.eup %1268  ;;  %v991_v25 = vadd.f32 %v1694_v12, %v963_v20  ;;  %v992_v41 = vadd.f32 %v1697_v13, %v964_v38  ;;  %v939_v23 = vmul.f32 %v1267_v59, %v923_v27  ;;  %v940_v28 = vmul.f32 %v1267_v59, %v924_v19 }
 0x226   : > { %v989_v29 = vadd.f32 %v1694_v12, %v961_v16  ;;  %v990_v17 = vadd.f32 %v1697_v13, %v962_v21  ;;  %v937_v30 = vmul.f32 %v1269_v22, %v921_v60  ;;  %v938_v31 = vmul.f32 %v1269_v22, %v922_v24 }
 0x227   : > { %1007 = vst [vmem:[%s1502_s6 + $0x10] sm:$0xff] %v991_v25  ;;  %1008 = vst [vmem:[%s1502_s6 + $0x18] sm:$0xff] %v992_v41  ;;  %v967_v32 = vmul.f32 %v1677_v53, %v939_v23  ;;  %v968_v33 = vmul.f32 %v1683_v0, %v940_v28 }
 0x228   : > { %v1271_v34 = vpop.eup %1270  ;;  %1005 = vst [vmem:[%s1502_s6] sm:$0xff] %v989_v29  ;;  %1006 = vst [vmem:[%s1502_s6 + $0x8] sm:$0xff] %v990_v17  ;;  %v965_v44 = vmul.f32 %v1677_v53, %v937_v30  ;;  %v966_v45 = vmul.f32 %v1683_v0, %v938_v31 }
 0x229   : > { %v1273_v58 = vpop.eup %1272  ;;  %v995_v37 = vadd.f32 %v1694_v12, %v967_v32  ;;  %v996_v42 = vadd.f32 %v1697_v13, %v968_v33  ;;  %v943_v43 = vmul.f32 %v1271_v34, %v927_v18  ;;  %v944_v47 = vmul.f32 %v1271_v34, %v928_v40 }
 0x22a   : > { %v993_v46 = vadd.f32 %v1694_v12, %v965_v44  ;;  %v994_v48 = vadd.f32 %v1697_v13, %v966_v45  ;;  %v941_v5 = vmul.f32 %v1273_v58, %v925_v35  ;;  %v942_v49 = vmul.f32 %v1273_v58, %v926_v36 }
 0x22b   : > { %1011 = vst [vmem:[%s1502_s6 + $0x30] sm:$0xff] %v995_v37  ;;  %1012 = vst [vmem:[%s1502_s6 + $0x38] sm:$0xff] %v996_v42  ;;  %v971_v52 = vmul.f32 %v1677_v53, %v943_v43  ;;  %v972_v61 = vmul.f32 %v1683_v0, %v944_v47 }
 0x22c   : > { %v1275_v62 = vpop.eup %1274  ;;  %1009 = vst [vmem:[%s1502_s6 + $0x20] sm:$0xff] %v993_v46  ;;  %1010 = vst [vmem:[%s1502_s6 + $0x28] sm:$0xff] %v994_v48  ;;  %v969_v54 = vmul.f32 %v1677_v53, %v941_v5  ;;  %v970_v55 = vmul.f32 %v1683_v0, %v942_v49 }
 0x22d   : > { %v1277_v10 = vpop.eup %1276  ;;  %v999_v2 = vadd.f32 %v1694_v12, %v971_v52  ;;  %v1000_v3 = vadd.f32 %v1697_v13, %v972_v61  ;;  %v947_v4 = vmul.f32 %v1275_v62, %v931_v50  ;;  %v948_v6 = vmul.f32 %v1275_v62, %v932_v51 }
 0x22e   : > { %v997_v56 = vadd.f32 %v1694_v12, %v969_v54  ;;  %v998_v57 = vadd.f32 %v1697_v13, %v970_v55  ;;  %v945_v11 = vmul.f32 %v1277_v10, %v929_v63  ;;  %v946_v7 = vmul.f32 %v1277_v10, %v930_v1 }
 0x22f   : > { %1015 = vst [vmem:[%s1502_s6 + $0x50] sm:$0xff] %v999_v2  ;;  %1016 = vst [vmem:[%s1502_s6 + $0x58] sm:$0xff] %v1000_v3  ;;  %v975_v8 = vmul.f32 %v1677_v53, %v947_v4  ;;  %v976_v9 = vmul.f32 %v1683_v0, %v948_v6 }
 0x230   : > { %1013 = vst [vmem:[%s1502_s6 + $0x40] sm:$0xff] %v997_v56  ;;  %1014 = vst [vmem:[%s1502_s6 + $0x48] sm:$0xff] %v998_v57  ;;  %v973_v26 = vmul.f32 %v1677_v53, %v945_v11  ;;  %v974_v14 = vmul.f32 %v1683_v0, %v946_v7 }
 0x231   : > { %v1003_v27 = vadd.f32 %v1694_v12, %v975_v8  ;;  %v1004_v39 = vadd.f32 %v1697_v13, %v976_v9 }
 0x232   : > { %v1001_v15 = vadd.f32 %v1694_v12, %v973_v26  ;;  %v1002_v19 = vadd.f32 %v1697_v13, %v974_v14 }
 0x233   : > { %1019 = vst [vmem:[%s1502_s6 + $0x70] sm:$0xff] %v1003_v27  ;;  %1020 = vst [vmem:[%s1502_s6 + $0x78] sm:$0xff] %v1004_v39 }
 0x234   : > { %1017 = vst [vmem:[%s1502_s6 + $0x60] sm:$0xff] %v1001_v15  ;;  %1018 = vst [vmem:[%s1502_s6 + $0x68] sm:$0xff] %v1002_v19 }
 0x235 PF: > { %s15_s24 = sadd.s32 1, %s1332_s24   ;;  %s1798_s18 = smov %s1312_s19 }
 0x236   : > { %p12_p13 = scmp.ge.s32.totalorder %s15_s24, 6   ;;  %s1799_s19 = smov %s1414_s29 }
 0x237   : > { %s1800_s20 = smov %s1324_s22  ;;  %s1801_s21 = smov %s1328_s23 }
 0x238   : > { %s1802_s22 = smov %s1805_s25  ;;  %s1803_s23 = smov %s1809_s26 }
 0x239   :  { %14 = sbr.rel (!%p12_p13) target bundleno = 4 (0x4), region = 128 }

</bundles_post_ra>
